<compile_context>
chip_gen: v6e
topology: v6e:2x2x1
jax: 0.10.0
libtpu: 0.0.40
codegen_flags: <defaults>
</compile_context>

<pallas_src>
import functools

import jax
import jax.numpy as jnp
from jax.experimental import pallas as pl
from jax.experimental.pallas import tpu as pltpu


# --------------------------------------------------------------------------
# Hardware introspection (best-effort, conservative fallbacks).
# --------------------------------------------------------------------------
def _tpu_generation_info():
    """Returns (vmem_bytes, tensorcores_per_chip)."""
    kind = ""
    try:
        kind = jax.devices()[0].device_kind.lower()
    except Exception:
        pass

    vmem_bytes = None
    try:
        info = pltpu.get_tpu_info()
        vmem_bytes = int(getattr(info, "vmem_capacity_bytes"))
    except Exception:
        vmem_bytes = None
    if vmem_bytes is None or vmem_bytes <= 0:
        if ("v5" in kind) or ("v6" in kind):
            vmem_bytes = 128 * 1024 * 1024
        else:
            vmem_bytes = 64 * 1024 * 1024      # conservative (v7x)

    num_cores = 2 if (("v7" in kind) or ("tpu7" in kind)) else 1
    return vmem_bytes, num_cores


def _sublane_align(dtype):
    bits = jnp.dtype(dtype).itemsize * 8
    if bits >= 32:
        return 8
    if bits == 16:
        return 16
    return 32


def _round_down(x, m):
    return max(m, (x // m) * m)


# --------------------------------------------------------------------------
# Kernel body.
# --------------------------------------------------------------------------
def _sdpa_kernel(q_ref, k_ref, v_ref, out_ref, attn_ref, log_attn_ref, *,
                 inv_temperature, fold_scale_into_q):
    # Blocks: q (NB, TQ, D), k (NB, Lk, D), v (NB, Lk, Dv).
    q = q_ref[...]
    k = k_ref[...]
    v = v_ref[...]

    if fold_scale_into_q:
        # f32 inputs: fold 1/temperature into the (small) Q operand —
        # TQ*D multiplies instead of TQ*Lk, no rounding concern in f32.
        q = q * jnp.asarray(inv_temperature, dtype=q.dtype)

    # attn_scores = q @ k^T, expressed directly as a contraction so Mosaic
    # feeds the MXU without an explicit transpose; native-dtype operands,
    # f32 accumulation.
    s = jax.lax.dot_general(
        q, k,
        dimension_numbers=(((2,), (2,)), ((0,), (0,))),
        preferred_element_type=jnp.float32)              # (NB, TQ, Lk) f32

    if not fold_scale_into_q:
        # Low-precision inputs: scale the f32 scores instead of rounding a
        # scaled Q in bf16; the TQ*Lk multiply sits in VALU slack.
        s = s * jnp.float32(inv_temperature)

    # Numerically-stable softmax / log_softmax along the last axis (torch dim=2).
    m = jnp.max(s, axis=-1, keepdims=True)
    shifted = s - m
    e = jnp.exp(shifted)
    denom = jnp.sum(e, axis=-1, keepdims=True)
    inv_denom = pl.reciprocal(denom, approx=False)       # EUP slot, exact
    attn = e * inv_denom
    log_attn = shifted - jnp.log(denom)

    # TODO(synk): nn.Dropout(0.1) is identity in eval mode; training-mode
    # stochastic dropout is intentionally not applied (deterministic kernel).

    # One low-precision cast of attn, reused for the matmul and the store.
    attn_lp = attn.astype(v.dtype)
    out = jax.lax.dot_general(
        attn_lp, v,
        dimension_numbers=(((2,), (1,)), ((0,), (0,))),
        preferred_element_type=jnp.float32)              # (NB, TQ, Dv) f32

    out_ref[...] = out.astype(out_ref.dtype)
    if attn_ref.dtype == v.dtype:
        attn_ref[...] = attn_lp
    else:
        attn_ref[...] = attn.astype(attn_ref.dtype)
    log_attn_ref[...] = log_attn.astype(log_attn_ref.dtype)


# --------------------------------------------------------------------------
# Tiling model.
# --------------------------------------------------------------------------
def _footprint_bytes(nb, tq, Lk, D, Dv, itemsize):
    """Per-grid-step VMEM footprint, incl. double-buffering and f32 temps."""
    # Pipeline blocks (q, k, v, out, attn, log_attn), double-buffered by Pallas.
    blocks = nb * (tq * D + Lk * D + Lk * Dv + tq * Dv + 2 * tq * Lk) * itemsize
    blocks *= 2
    # Live f32 intermediates in the body: s/shifted/e/attn/log_attn (score
    # sized) plus the f32 output accumulator.
    interm = nb * (5 * tq * Lk + tq * Dv) * 4
    return blocks + interm


def _choose_tiles(B, Lq, Lk, D, Dv, dtype, vmem_bytes, num_cores):
    """Pick (batch_block, q_tile), generation-aware."""
    itemsize = jnp.dtype(dtype).itemsize
    align = _sublane_align(dtype)
    budget = vmem_bytes // 2          # ~64 MiB on v5e/v6e, ~32 MiB on v7x

    def fp(nb, tq):
        return _footprint_bytes(nb, tq, Lk, D, Dv, itemsize)

    # Tiny-problem fast path: one block covers everything.
    if fp(B, Lq) <= min(budget, 8 * 1024 * 1024):
        if num_cores >= 2:
            # Make sure both TensorCores get work: >= 2 grid steps.
            if B >= 2:
                return (B + 1) // 2, Lq
            if Lq >= 2 * align:
                return B, _round_down(Lq // 2, align)
        return B, Lq

    # General path: one batch element per step; pick the largest lane-friendly
    # q-tile that fits the budget.  Prefer multiples of 256 (v6e/v7x MXU is
    # 2x256^2), then 128; never drop below 128 (MXU fill + unmasked vst).
    candidates = (1024, 768, 512, 384, 256, 128)
    tq = None
    for c in candidates:
        if c <= Lq and fp(1, c) <= budget:
            tq = c
            break
    if tq is None:
        if Lq <= 128:
            tq = Lq                     # full extent; always legal
        else:
            # Keep the MXU/store-friendly floor and rely on the raised vmem
            # limit.  TODO(synk): for extreme Lk, tile Lk on an 'arbitrary'
            # grid axis (two-pass softmax) instead of relying on this floor.
            tq = 128

    # When a single q-tile already covers Lq, pack several batch elements per
    # step to amortize the ~0.35 us/step overhead (keep >= 2 steps on 2-TC).
    nb = 1
    if tq >= Lq:
        while nb * 2 <= B and fp(nb * 2, tq) <= budget:
            nb *= 2
        if num_cores >= 2 and B >= 2 and (B + nb - 1) // nb < 2:
            nb = (B + 1) // 2
    return nb, tq


# --------------------------------------------------------------------------
# Public entry point.
# --------------------------------------------------------------------------
def scaled_dot_product_attention(q, k, v, temperature, *, force_pallas=False):
    B, Lq, D = q.shape
    Bk, Lk, Dk = k.shape
    Bv, Lkv, Dv = v.shape
    assert D == Dk and Bk == B and Bv == B and Lkv == Lk

    # Sub-vreg problems: the pipeline/launch overhead exceeds the work and
    # every block pads to (8,128) tiles — let XLA fusion handle it.
    tiny = (Lq * Lk < 128 * 128) and (B * Lq * Lk <= 64 * 1024)
    if tiny and not force_pallas:
        return _reference(q, k, v, temperature)

    vmem_bytes, num_cores = _tpu_generation_info()
    nb, tq = _choose_tiles(B, Lq, Lk, D, Dv, q.dtype, vmem_bytes, num_cores)
    grid = (pl.cdiv(B, nb), pl.cdiv(Lq, tq))

    vmem_limit = min(int(vmem_bytes * 3 // 4), 100 * 1024 * 1024)

    kernel = functools.partial(
        _sdpa_kernel,
        inv_temperature=1.0 / float(temperature),
        fold_scale_into_q=(jnp.dtype(q.dtype) == jnp.float32))

    out_shapes = (
        jax.ShapeDtypeStruct((B, Lq, Dv), q.dtype),   # output
        jax.ShapeDtypeStruct((B, Lq, Lk), q.dtype),   # attn
        jax.ShapeDtypeStruct((B, Lq, Lk), q.dtype),   # log_attn
    )

    return pl.pallas_call(
        kernel,
        out_shape=out_shapes,
        grid_spec=pltpu.PrefetchScalarGridSpec(
            num_scalar_prefetch=0,
            grid=grid,                              # (batch blocks, q tiles)
            in_specs=[
                pl.BlockSpec((nb, tq, D), lambda b, i: (b, i, 0)),
                # K/V index maps are constant in the inner q-tile axis, so the
                # same K/V block stays resident across consecutive grid steps.
                pl.BlockSpec((nb, Lk, D), lambda b, i: (b, 0, 0)),
                pl.BlockSpec((nb, Lk, Dv), lambda b, i: (b, 0, 0)),
            ],
            out_specs=[
                pl.BlockSpec((nb, tq, Dv), lambda b, i: (b, i, 0)),
                # Lane dim is the full Lk -> lane-dense (unmasked) stores for
                # the two big writeback arrays whenever Lk % 128 == 0.
                pl.BlockSpec((nb, tq, Lk), lambda b, i: (b, i, 0)),
                pl.BlockSpec((nb, tq, Lk), lambda b, i: (b, i, 0)),
            ],
        ),
        compiler_params=pltpu.CompilerParams(
            dimension_semantics=("parallel", "parallel"),
            vmem_limit_bytes=vmem_limit,
        ),
    )(q, k, v)


def _reference(q, k, v, temperature):
    s = jnp.einsum("bqd,bkd->bqk", q, k,
                   preferred_element_type=jnp.float32) / temperature
    attn = jax.nn.softmax(s, axis=2)
    log_attn = jax.nn.log_softmax(s, axis=2)
    out = jnp.einsum("bqk,bkd->bqd", attn.astype(v.dtype), v,
                     preferred_element_type=jnp.float32)
    return (out.astype(q.dtype), attn.astype(q.dtype), log_attn.astype(q.dtype))


if __name__ == "__main__":
    key = jax.random.PRNGKey(0)
    key_small, key_med = jax.random.split(key)

    def make_inputs(subkey, B, Lq, Lk, D, Dv, dtype=jnp.float32):
        kq, kk, kv = jax.random.split(subkey, 3)
        q = jax.random.normal(kq, (B, Lq, D), dtype=dtype)
        k = jax.random.normal(kk, (B, Lk, D), dtype=dtype)
        v = jax.random.normal(kv, (B, Lk, Dv), dtype=dtype)
        return q, k, v

    # Case 1: the module's own small shape (batch=2, seq=8, hidden=32),
    # forced through the Pallas kernel so the kernel itself is exercised.
    B, Lq, Lk, D, Dv = 2, 8, 8, 32, 32
    temperature = float(D) ** 0.5
    q, k, v = make_inputs(key_small, B, Lq, Lk, D, Dv)
    out, attn, log_attn = scaled_dot_product_attention(
        q, k, v, temperature, force_pallas=True)
    jax.block_until_ready((out, attn, log_attn))
    out_r, attn_r, log_attn_r = _reference(q, k, v, temperature)
    assert jnp.allclose(out, out_r, atol=2e-5, rtol=2e-5)
    assert jnp.allclose(attn, attn_r, atol=2e-5, rtol=2e-5)
    assert jnp.allclose(log_attn, log_attn_r, atol=2e-5, rtol=2e-5)

    # Same shape through the default dispatcher (tiny -> fused XLA fallback).
    out2, attn2, log2 = scaled_dot_product_attention(q, k, v, temperature)
    jax.block_until_ready((out2, attn2, log2))
    assert jnp.allclose(out2, out_r, atol=2e-5, rtol=2e-5)
    assert jnp.allclose(attn2, attn_r, atol=2e-5, rtol=2e-5)
    assert jnp.allclose(log2, log_attn_r, atol=2e-5, rtol=2e-5)

    # Case 2: a moderately larger shape that exercises the tiled Pallas path
    # (lane-dense Lk=256 stores, aligned q tiles, resident K/V blocks).
    B2, Lq2, Lk2, D2, Dv2 = 2, 256, 256, 64, 64
    temperature2 = float(D2) ** 0.5
    q2, k2, v2 = make_inputs(key_med, B2, Lq2, Lk2, D2, Dv2)
    out3, attn3, log3 = scaled_dot_product_attention(q2, k2, v2, temperature2)
    jax.block_until_ready((out3, attn3, log3))
    out3_r, attn3_r, log3_r = _reference(q2, k2, v2, temperature2)
    assert jnp.allclose(out3, out3_r, atol=2e-5, rtol=2e-5)
    assert jnp.allclose(attn3, attn3_r, atol=2e-5, rtol=2e-5)
    assert jnp.allclose(log3, log3_r, atol=2e-5, rtol=2e-5)

    print("KERNEL_OK")
</pallas_src>

<mosaic_0001>
module attributes {stable_mosaic.version = 11 : i64} {
  func.func @_sdpa_kernel(%arg0: i32, %arg1: i32, %arg2: memref<2x8x32xf32, #tpu.memory_space<vmem>>, %arg3: memref<2x8x32xf32, #tpu.memory_space<vmem>>, %arg4: memref<2x8x32xf32, #tpu.memory_space<vmem>>, %arg5: memref<2x8x32xf32, #tpu.memory_space<vmem>>, %arg6: memref<2x8x8xf32, #tpu.memory_space<vmem>>, %arg7: memref<2x8x8xf32, #tpu.memory_space<vmem>>) attributes {dimension_semantics = [#tpu.dimension_semantics<parallel>, #tpu.dimension_semantics<parallel>], iteration_bounds = array<i64: 1, 1>, scalar_prefetch = 0 : i64, scratch_operands = 0 : i64, tpu.core_type = #tpu.core_type<tc>, window_params = [{transform_indices = @transform_0, window_bounds = array<i64: 2, 8, 32>}, {transform_indices = @transform_1, window_bounds = array<i64: 2, 8, 32>}, {transform_indices = @transform_2, window_bounds = array<i64: 2, 8, 32>}, {transform_indices = @transform_3, window_bounds = array<i64: 2, 8, 32>}, {transform_indices = @transform_4, window_bounds = array<i64: 2, 8, 8>}, {transform_indices = @transform_5, window_bounds = array<i64: 2, 8, 8>}]} {
    %c0 = arith.constant 0 : index
    %c0_0 = arith.constant 0 : index
    %c0_1 = arith.constant 0 : index
    %0 = vector.load %arg2[%c0, %c0_0, %c0_1] : memref<2x8x32xf32, #tpu.memory_space<vmem>>, vector<2x8x32xf32>
    %c0_2 = arith.constant 0 : index
    %c0_3 = arith.constant 0 : index
    %c0_4 = arith.constant 0 : index
    %1 = vector.load %arg3[%c0_2, %c0_3, %c0_4] : memref<2x8x32xf32, #tpu.memory_space<vmem>>, vector<2x8x32xf32>
    %c0_5 = arith.constant 0 : index
    %c0_6 = arith.constant 0 : index
    %c0_7 = arith.constant 0 : index
    %2 = vector.load %arg4[%c0_5, %c0_6, %c0_7] : memref<2x8x32xf32, #tpu.memory_space<vmem>>, vector<2x8x32xf32>
    %cst = arith.constant 0.176776692 : f32
    %3 = vector.broadcast %cst : f32 to vector<2x8x32xf32>
    %4 = arith.mulf %0, %3 : vector<2x8x32xf32>
    %cst_8 = arith.constant dense<0.000000e+00> : vector<2x8x8xf32>
    %5 = tpu.matmul %4, %1, %cst_8 {dimension_numbers = #tpu.dot_dimension_numbers<[2], [2], [1], [1], [0, 0, 0, 1, 1, 1], [0], [0]>} : vector<2x8x32xf32>, vector<2x8x32xf32>, vector<2x8x8xf32> -> vector<2x8x8xf32>
    %cst_9 = arith.constant dense<0xFF800000> : vector<2x8xf32>
    %6 = vector.multi_reduction <maximumf>, %5, %cst_9 [2] : vector<2x8x8xf32> to vector<2x8xf32>
    %7 = vector.shape_cast %6 : vector<2x8xf32> to vector<2x8x1xf32>
    %8 = vector.broadcast %7 : vector<2x8x1xf32> to vector<2x8x8xf32>
    %9 = arith.subf %5, %8 : vector<2x8x8xf32>
    %10 = math.exp %9 : vector<2x8x8xf32>
    %cst_10 = arith.constant dense<0.000000e+00> : vector<2x8xf32>
    %11 = vector.multi_reduction <add>, %10, %cst_10 [2] : vector<2x8x8xf32> to vector<2x8xf32>
    %12 = vector.shape_cast %11 : vector<2x8xf32> to vector<2x8x1xf32>
    %13 = tpu.reciprocal %12 : vector<2x8x1xf32> -> vector<2x8x1xf32>
    %14 = vector.broadcast %13 : vector<2x8x1xf32> to vector<2x8x8xf32>
    %15 = arith.mulf %10, %14 : vector<2x8x8xf32>
    %16 = math.log %12 : vector<2x8x1xf32>
    %17 = vector.broadcast %16 : vector<2x8x1xf32> to vector<2x8x8xf32>
    %18 = arith.subf %9, %17 : vector<2x8x8xf32>
    %cst_11 = arith.constant dense<0.000000e+00> : vector<2x8x32xf32>
    %19 = tpu.matmul %15, %2, %cst_11 {dimension_numbers = #tpu.dot_dimension_numbers<[2], [1], [1], [2], [0, 0, 0, 1, 1, 2], [0], [0]>} : vector<2x8x8xf32>, vector<2x8x32xf32>, vector<2x8x32xf32> -> vector<2x8x32xf32>
    %c0_12 = arith.constant 0 : index
    %c0_13 = arith.constant 0 : index
    %c0_14 = arith.constant 0 : index
    %20 = vector.load %arg5[%c0_12, %c0_13, %c0_14] : memref<2x8x32xf32, #tpu.memory_space<vmem>>, vector<2x8x32xf32>
    tpu.vector_store %arg5[%c0_12, %c0_13, %c0_14], %19 {strides = array<i32>} : memref<2x8x32xf32, #tpu.memory_space<vmem>>, vector<2x8x32xf32>,
    %c0_15 = arith.constant 0 : index
    %c0_16 = arith.constant 0 : index
    %c0_17 = arith.constant 0 : index
    %21 = vector.load %arg6[%c0_15, %c0_16, %c0_17] : memref<2x8x8xf32, #tpu.memory_space<vmem>>, vector<2x8x8xf32>
    tpu.vector_store %arg6[%c0_15, %c0_16, %c0_17], %15 {strides = array<i32>} : memref<2x8x8xf32, #tpu.memory_space<vmem>>, vector<2x8x8xf32>,
    %c0_18 = arith.constant 0 : index
    %c0_19 = arith.constant 0 : index
    %c0_20 = arith.constant 0 : index
    %22 = vector.load %arg7[%c0_18, %c0_19, %c0_20] : memref<2x8x8xf32, #tpu.memory_space<vmem>>, vector<2x8x8xf32>
    tpu.vector_store %arg7[%c0_18, %c0_19, %c0_20], %18 {strides = array<i32>} : memref<2x8x8xf32, #tpu.memory_space<vmem>>, vector<2x8x8xf32>,
    return
  }
  func.func @transform_0(%arg0: i32, %arg1: i32) -> (i32, i32, i32) {
    %c0_i32 = arith.constant 0 : i32
    %c0_i32_0 = arith.constant 0 : i32
    return %arg0, %arg1, %c0_i32 : i32, i32, i32
  }
  func.func @transform_1(%arg0: i32, %arg1: i32) -> (i32, i32, i32) {
    %c0_i32 = arith.constant 0 : i32
    %c0_i32_0 = arith.constant 0 : i32
    %c0_i32_1 = arith.constant 0 : i32
    return %arg0, %c0_i32, %c0_i32_0 : i32, i32, i32
  }
  func.func @transform_2(%arg0: i32, %arg1: i32) -> (i32, i32, i32) {
    %c0_i32 = arith.constant 0 : i32
    %c0_i32_0 = arith.constant 0 : i32
    %c0_i32_1 = arith.constant 0 : i32
    return %arg0, %c0_i32, %c0_i32_0 : i32, i32, i32
  }
  func.func @transform_3(%arg0: i32, %arg1: i32) -> (i32, i32, i32) {
    %c0_i32 = arith.constant 0 : i32
    %c0_i32_0 = arith.constant 0 : i32
    return %arg0, %arg1, %c0_i32 : i32, i32, i32
  }
  func.func @transform_4(%arg0: i32, %arg1: i32) -> (i32, i32, i32) {
    %c0_i32 = arith.constant 0 : i32
    %c0_i32_0 = arith.constant 0 : i32
    return %arg0, %arg1, %c0_i32 : i32, i32, i32
  }
  func.func @transform_5(%arg0: i32, %arg1: i32) -> (i32, i32, i32) {
    %c0_i32 = arith.constant 0 : i32
    %c0_i32_0 = arith.constant 0 : i32
    return %arg0, %arg1, %c0_i32 : i32, i32, i32
  }
}

</mosaic_0001>

<bundles_post_ra>
// kernel: tpu_custom_call.1
= control target key start
LH: loop header
LB: loop body
LE: loop exit
PB: predicated region body
PF: predicated region fallthrough
CT: control target
= control target key end

     0   :  { %11 = vsyncpa [#allocation3], 0  ;;  %s731_s0 = inlined_call_operand.hbm [shape: f32[2,8,32], index: 0, kind: input, shape index: {}]   ;;  %s732_s1 = inlined_call_operand.hbm [shape: f32[2,8,32], index: 1, kind: input, shape index: {}]   ;;  %s733_s2 = inlined_call_operand.hbm [shape: f32[2,8,32], index: 2, kind: input, shape index: {}]   ;;  %s734_s3 = inlined_call_operand.hbm [shape: f32[2,8,32], index: 3, kind: output, shape index: {0}]   ;;  %s735_s4 = inlined_call_operand.hbm [shape: f32[2,8,8], index: 4, kind: output, shape index: {1}]   ;;  %s736_s5 = inlined_call_operand.hbm [shape: f32[2,8,8], index: 5, kind: output, shape index: {2}]  }
   0x1   :  { %12 = vsyncpa [#allocation6], 0 }
   0x2   :  { %13 = vsyncpa [#allocation4], 0 }
   0x3   :  { %14 = vsyncpa [#allocation10], 0  ;;  %s635_s18 = smov [#allocation5]   ;;  %s636_s20 = smov [#allocation2]  }
   0x4   :  { %s32_s19 = sshll.u32 %s635_s18, 4  ;;  %s20_s21 = sshll.u32 %s636_s20, 4  ;;  %s33_s19 = int_to_ptr.vmem [resolvable:$true] %s32_s19  ;;  %s21_s21 = int_to_ptr.vmem [resolvable:$true] %s20_s21 }
   0x5   :  { %s515_s22 = scalar_lea.vmem %s33_s19, 256  ;;  %p520_p1 = scmp.lt.s32.totalorder %s33_s19, %s33_s19 }
   0x6   :  { %p516_p0 = scmp.ne.s32.totalorder %s33_s19, %s515_s22  ;;  %p521_p2 = scmp.lt.s32.totalorder %s515_s22, %s515_s22 }
   0x8   :  { %p522_p3 = por %p521_p2, %p520_p1 }
   0xa   :  { %p523_p4 = pnand %p522_p3, %p516_p0 }
   0xc   :  { %526 = shalt.err (!%p523_p4)
}
   0xd   :  { %s637_s23 = smov 128   ;;  %s638_s24 = smov 8  }
   0xe   :  { %38 = dma.hbm_to_vmem [thread:$0]  %s732_s1, 256, %s33_s19, [#allocation6], %s637_s23, %s637_s23, %s638_s24  }
   0xf   :  { %s535_s27 = scalar_lea.vmem %s21_s21, 256  ;;  %p540_p6 = scmp.lt.s32.totalorder %s21_s21, %s21_s21 }
  0x10   :  { %p536_p5 = scmp.ne.s32.totalorder %s21_s21, %s535_s27  ;;  %p541_p7 = scmp.lt.s32.totalorder %s535_s27, %s535_s27 }
  0x12   :  { %p542_p8 = por %p541_p7, %p540_p6 }
  0x14   :  { %p543_p9 = pnand %p542_p8, %p536_p5 }
  0x16   :  { %546 = shalt.err (!%p543_p9)
}
  0x17   :  { %26 = dma.hbm_to_vmem [thread:$0]  %s731_s0, 256, %s21_s21, [#allocation3], %s637_s23, %s637_s23, %s638_s24  }
  0x18   :  { %s639_s30 = smov [#allocation7]  }
  0x19   :  { %s44_s6 = sshll.u32 %s639_s30, 4  ;;  %s45_s6 = int_to_ptr.vmem [resolvable:$true] %s44_s6 }
  0x1a   :  { %s555_s7 = scalar_lea.vmem %s45_s6, 256  ;;  %p560_p11 = scmp.lt.s32.totalorder %s45_s6, %s45_s6 }
  0x1b   :  { %p556_p10 = scmp.ne.s32.totalorder %s45_s6, %s555_s7  ;;  %p561_p12 = scmp.lt.s32.totalorder %s555_s7, %s555_s7 }
  0x1d   :  { %p562_p13 = por %p561_p12, %p560_p11 }
  0x1f   :  { %p563_p0 = pnand %p562_p13, %p556_p10 }
  0x21   :  { %566 = shalt.err (!%p563_p0)
}
  0x22   :  { %50 = dma.hbm_to_vmem [thread:$0]  %s733_s2, 256, %s45_s6, [#allocation6], %s637_s23, %s637_s23, %s638_s24  }
  0x23   :  { %627 = dma.done.wait [#allocation3], 256  }
  0x24   :  { %628 = vsyncadd [#allocation3], 4294967040 }
  0x25   :  { %629 = dma.done.wait [#allocation6], 512  }
  0x26   :  { %630 = vsyncadd [#allocation6], 4294966784  ;;  %v640_v0 = vmov 0.0   ;;  %vm641_vm0 = vmmov 0   ;;  %vm68_vm1 = vcmask 261120   ;;  %v62_v1 = vld [vmem:[#allocation5] sm:$0xff] }
  0x27   :  { %465 = vmatprep.subr.mxu0 %v640_v0  ;;  %470 = vmatprep.subr.mxu1 %v640_v0  ;;  %v63_v2 = vld [vmem:[#allocation5 + $0x8] sm:$0xff]  ;;  %v60_v3 = vld [vmem:[#allocation2] sm:$0xff]  ;;  %v61_v5 = vld [vmem:[#allocation2 + $0x8] sm:$0xff]  ;;  %vm221_vm2 = vcmask 64512   ;;  %s642_s0 = smov [#allocation9]  }
  0x28   :  { %467 = vmatprep.mubr.msk.f32.mxu0 %vm641_vm0, %v640_v0  ;;  %472 = vmatprep.mubr.msk.f32.mxu1 %vm641_vm0, %v640_v0  ;;  %v66_v4 = vmul.f32 0.17677669, %v60_v3  ;;  %v67_v6 = vmul.f32 0.17677669, %v61_v5  ;;  %v64_v23 = vld [vmem:[#allocation7] sm:$0xff]  ;;  %v65_v24 = vld [vmem:[#allocation7 + $0x8] sm:$0xff] }
  0x29   :  { %466 = vmatpush3.xpose.msk.msra.mxu0 %vm68_vm1, %v62_v1  ;;  %471 = vmatpush3.xpose.msk.msra.mxu1 %vm68_vm1, %v63_v2  ;;  %s419_s2 = sshll.u32 %s642_s0, 4  ;;  %s420_s2 = int_to_ptr.vmem [resolvable:$true] %s419_s2 }
  0x2a   :  { %475 = vmatprep.subr.mxu0 %v640_v0  ;;  %480 = vmatprep.subr.mxu1 %v640_v0  ;;  %s567_s9 = scalar_lea.vmem %s420_s2, 256  ;;  %p572_p2 = scmp.lt.s32.totalorder %s420_s2, %s420_s2 }
  0x2b   :  { %p568_p1 = scmp.ne.s32.totalorder %s420_s2, %s567_s9  ;;  %p573_p3 = scmp.lt.s32.totalorder %s567_s9, %s567_s9 }
  0x2c   :  { %468 = vmatmul.mubr.msk.f32.vlgmr.msra.gmra.mxu0 %vm68_vm1, %v66_v4  ;;  %473 = vmatmul.mubr.msk.f32.vlgmr.msra.gmra.mxu1 %vm68_vm1, %v67_v6 }
  0x2d   :  { %477 = vmatprep.mubr.msk.f32.mxu0 %vm641_vm0, %v640_v0  ;;  %482 = vmatprep.mubr.msk.f32.mxu1 %vm641_vm0, %v640_v0  ;;  %p574_p4 = por %p573_p3, %p572_p2 }
  0x2e   :  { %476 = vmatpush3.msra.mxu0 %v64_v23  ;;  %481 = vmatpush3.msra.mxu1 %v65_v24 }
  0x2f   :  { %p575_p5 = pnand %p574_p4, %p568_p1 }
  0xec   :  { %v141_v7 = vpop.f32.mrf.mxu0  ;;  %v217_v8 = vpop.f32.mrf.mxu1 }
  0xed   :  { %v222_v9 = vsel %vm221_vm2, %v141_v7, -inf  ;;  %v225_v12 = vsel %vm221_vm2, %v217_v8, -inf }
  0xee   :  { %223 = vmax.xlane.f32.xlu0 %v222_v9  ;;  %v469_v10 = vpop.f32.mrf.mxu0  ;;  %v474_v11 = vpop.f32.mrf.mxu1 }
  0xf2   :  { %226 = vmax.xlane.f32.xlu0 %v225_v12 }
 0x177   :  { %v224_v13 = vpop.xlane.xlu0 %223 }
 0x178   :  { %v228_v14 = vsub.f32 %v141_v7, %v224_v13 }
 0x17a   :  { %v230_v15 = vmul.f32 1.442695, %v228_v14 }
 0x17b   :  { %v227_v16 = vpop.xlane.xlu0 %226 }
 0x17c   :  { %495 = vpow2.f32 %v230_v15  ;;  %v229_v17 = vsub.f32 %v217_v8, %v227_v16 }
 0x17e   :  { %v232_v18 = vmul.f32 1.442695, %v229_v17 }
 0x180   :  { %497 = vpow2.f32 %v232_v18 }
 0x189   :  { %v496_v19 = vpop.eup %495 }
 0x18a   :  { %v234_v20 = vsel %vm221_vm2, %v496_v19, 0.0 }
 0x18b   :  { %235 = vadd.xlane.f32.xlu1 %v234_v20 }
 0x18d   :  { %v498_v21 = vpop.eup %497 }
 0x18e   :  { %v237_v22 = vsel %vm221_vm2, %v498_v21, 0.0 }
 0x18f   :  { %238 = vadd.xlane.f32.xlu1 %v237_v22 }
 0x214   :  { %v236_v25 = vpop.xlane.xlu1 %235 }
 0x215   :  { %499 = vrcp.f32 %v236_v25 }
 0x216   :  { %501 = vlog2.f32 %v236_v25 }
 0x218   :  { %v239_v26 = vpop.xlane.xlu1 %238 }
 0x219   :  { %503 = vrcp.f32 %v239_v26 }
 0x21a   :  { %505 = vlog2.f32 %v239_v26 }
 0x222   :  { %v500_v27 = vpop.eup %499 }
 0x223   :  { %v502_v28 = vpop.eup %501  ;;  %v242_v29 = vmul.f32 %v500_v27, %v496_v19 }
 0x224   :  { %v245_v30 = vmul.f32 0.6931472, %v502_v28 }
 0x225   :  { %478 = vmatmul.mubr.msk.f32.vlgmr.msra.gmra.mxu0 %vm221_vm2, %v242_v29  ;;  %398 = vst.msk [vmem:[#allocation9] sm:$0xff] %vm221_vm2, %v242_v29 }
 0x226   :  { %v504_v31 = vpop.eup %503  ;;  %v248_v32 = vsub.f32 %v228_v14, %v245_v30 }
 0x227   :  { %v506_v33 = vpop.eup %505  ;;  %v243_v34 = vmul.f32 %v504_v31, %v498_v21 }
 0x228   :  { %400 = vst.msk [vmem:[#allocation11] sm:$0xff] %vm221_vm2, %v248_v32  ;;  %v247_v35 = vmul.f32 0.6931472, %v506_v33 }
 0x229   :  { %483 = vmatmul.mubr.msk.f32.vlgmr.msra.gmra.mxu1 %vm221_vm2, %v243_v34  ;;  %399 = vst.msk [vmem:[#allocation9 + $0x8] sm:$0xff] %vm221_vm2, %v243_v34 }
 0x22a   :  { %v249_v36 = vsub.f32 %v229_v17, %v247_v35 }
 0x22c   :  { %401 = vst.msk [vmem:[#allocation11 + $0x8] sm:$0xff] %vm221_vm2, %v249_v36 }
 0x22d   :  { %578 = shalt.err (!%p575_p5)
}
 0x22e   :  { %425 = dma.vmem_to_hbm [thread:$0]  %s420_s2, 256, %s735_s4, [#allocation10], %s637_s23, %s637_s23, %s638_s24  }
 0x22f   :  { %s643_s12 = smov [#allocation11]  }
 0x230   :  { %s431_s13 = sshll.u32 %s643_s12, 4  ;;  %s432_s13 = int_to_ptr.vmem [resolvable:$true] %s431_s13 }
 0x231   :  { %s587_s14 = scalar_lea.vmem %s432_s13, 256  ;;  %p592_p7 = scmp.lt.s32.totalorder %s432_s13, %s432_s13 }
 0x232   :  { %p588_p6 = scmp.ne.s32.totalorder %s432_s13, %s587_s14  ;;  %p593_p8 = scmp.lt.s32.totalorder %s587_s14, %s587_s14 }
 0x234   :  { %p594_p9 = por %p593_p8, %p592_p7 }
 0x236   :  { %p595_p10 = pnand %p594_p9, %p588_p6 }
 0x238   :  { %598 = shalt.err (!%p595_p10)
}
 0x239   :  { %437 = dma.vmem_to_hbm [thread:$0]  %s432_s13, 256, %s736_s5, [#allocation10], %s637_s23, %s637_s23, %s638_s24  }
 0x23a   :  { %s644_s17 = smov [#allocation8]  }
 0x23b   :  { %s407_s4 = sshll.u32 %s644_s17, 4  ;;  %s408_s4 = int_to_ptr.vmem [resolvable:$true] %s407_s4 }
 0x23c   :  { %s607_s18 = scalar_lea.vmem %s408_s4, 256  ;;  %p612_p12 = scmp.lt.s32.totalorder %s408_s4, %s408_s4 }
 0x23d   :  { %p608_p11 = scmp.ne.s32.totalorder %s408_s4, %s607_s18  ;;  %p613_p13 = scmp.lt.s32.totalorder %s607_s18, %s607_s18 }
 0x23f   :  { %p614_p0 = por %p613_p13, %p612_p12 }
 0x241   :  { %p615_p1 = pnand %p614_p0, %p608_p11 }
 0x2e5   :  { %v319_v37 = vpop.f32.mrf.mxu0 }
 0x2e6   :  { %396 = vst.msk [vmem:[#allocation8] sm:$0xff] %vm68_vm1, %v319_v37 }
 0x2e7   :  { %v479_v38 = vpop.f32.mrf.mxu0 }
 0x2e9   :  { %v392_v39 = vpop.f32.mrf.mxu1 }
 0x2ea   :  { %397 = vst.msk [vmem:[#allocation8 + $0x8] sm:$0xff] %vm68_vm1, %v392_v39 }
 0x2eb   :  { %v484_v40 = vpop.f32.mrf.mxu1 }
 0x2ec   :  { %618 = shalt.err (!%p615_p1)
}
 0x2ed   :  { %413 = dma.vmem_to_hbm [thread:$0]  %s408_s4, 256, %s734_s3, [#allocation4], %s637_s23, %s637_s23, %s638_s24  }
 0x2ee   :  { %631 = dma.done.wait [#allocation4], 256  }
 0x2ef   :  { %632 = vsyncadd [#allocation4], 4294967040 }
 0x2f0   :  { %633 = dma.done.wait [#allocation10], 512  }
 0x2f1   :  { %634 = vsyncadd [#allocation10], 4294966784 }
 0x2f2   :  { %447 = vsyncpa [#allocation3], 1 }
 0x2f3   :  { %448 = vsyncpa [#allocation6], 1 }
 0x2f4   :  { %449 = vsyncpa [#allocation4], 1 }
 0x2f5   :  { %450 = vsyncpa [#allocation10], 1 }

</bundles_post_ra>
